<compile_context>
chip_gen: v7x
topology: tpu7x:2x2x1
jax: 0.10.0
libtpu: 0.0.40
codegen_flags: <defaults>
</compile_context>

<pallas_src>
import functools

import jax
import jax.numpy as jnp
from jax.experimental import pallas as pl
from jax.experimental.pallas import tpu as pltpu


def _dice_partial_kernel(x_ref, lbl_ref, *rest, n_classes, hw, tile_n,
                         do_softmax, has_ignore, has_tail):
    if has_ignore:
        ig_ref, out_ref = rest
    else:
        ig_ref = None
        (out_ref,) = rest

    i = pl.program_id(1)  # pixel-tile index (reduction axis)

    @pl.when(i == 0)
    def _init():
        out_ref[...] = jnp.zeros_like(out_ref)

    x = x_ref[...].astype(jnp.float32)            # (C, tile) logits / probs
    lbl = lbl_ref[...]                            # (1, tile) int32 labels

    needs_mask = has_tail or has_ignore
    keep = None
    if needs_mask:
        valid = None
        if has_tail:
            lane = jax.lax.broadcasted_iota(jnp.int32, (1, tile_n), 1)
            valid = (i * tile_n + lane) < hw
        if has_ignore:
            # reference semantics: drop pixels where ignore == 1 from BOTH the
            # score and the target sums.
            ig_ok = ig_ref[...] != 1
            valid = ig_ok if valid is None else jnp.logical_and(valid, ig_ok)
        keep = valid.astype(jnp.float32)          # (1, tile)
        # Sanitize: lanes past the array end hold undefined VMEM (may be NaN);
        # zero them before exp so the masked products below stay finite.
        x = jnp.where(valid, x, 0.0)

    if do_softmax:
        m = jnp.max(x, axis=0, keepdims=True)
        e = jnp.exp(x - m)
        denom = jnp.sum(e, axis=0, keepdims=True)
        # exact reciprocal (1 EUP recip + C VPU mults); accuracy matters for
        # the 1e-5-scale smooth term, so keep approx=False.
        p = e * pl.reciprocal(denom, approx=False)
    else:
        p = x

    # one-hot encode integer labels against class ids 0..C-1 (integer compare)
    cls = jax.lax.broadcasted_iota(jnp.int32, (n_classes, 1), 0)
    onehot = (lbl == cls).astype(jnp.float32)     # (C, tile)

    if needs_mask:
        s = p * keep                              # masked score
        t = onehot * keep                         # masked target
    else:
        s = p
        t = onehot

    i_prod = s * onehot       # intersect integrand (keep^2 == keep)
    z_prod = s * p            # score^2 * keep
    y_prod = t                # target^2 == target for one-hot

    def fold(v):              # (C, k*128) -> (C, 128): pure-VPU halving tree
        w = v.shape[-1]
        while w > 128:
            h = w // 2
            v = v[:, :h] + v[:, h:w]
            w = h
        return v

    # lane-dense accumulation into the per-batch resident output block;
    # the single cross-lane reduce happens once, in the wrapper.
    out_ref[0, :, :] += fold(i_prod)
    out_ref[1, :, :] += fold(z_prod)
    out_ref[2, :, :] += fold(y_prod)


def dice_loss(inputs, target, n_classes, weight=None, softmax=False,
              ignore=None, tile_n=32768):
    """Pallas DiceLoss.forward.

    inputs: (B, C, H, W) logits (any float dtype; cast to f32 inside kernel).
    target: (B, 1, H, W) or (B, H, W) integer class labels.
    ignore: optional per-pixel mask; pixels where ignore == 1 are excluded.
    weight: optional per-class weights (list/array of length n_classes).
    """
    B, C, H, W = inputs.shape
    assert C == n_classes, "predict & target shape do not match"
    hw = H * W

    x = inputs.reshape(B, C, hw)                        # free, contiguous
    lbl = target.reshape(B, 1, hw).astype(jnp.int32)

    # Tile = power-of-two multiple of 128 (keeps the in-kernel halving fold
    # 128-aligned), capped by the lane-rounded pixel count.
    hw128 = pl.cdiv(hw, 128) * 128
    tile = max(128, min(int(tile_n), hw128))
    chunks = 1 << ((tile // 128).bit_length() - 1)      # floor power of two
    tile = chunks * 128
    num_tiles = pl.cdiv(hw, tile)
    has_tail = (hw % tile) != 0

    args = [x, lbl]
    in_specs = [
        pl.BlockSpec((None, C, tile), lambda b, i: (b, 0, i)),     # logits
        pl.BlockSpec((None, 1, tile), lambda b, i: (b, 0, i)),     # labels
    ]
    if ignore is not None:
        args.append(ignore.reshape(B, 1, hw).astype(jnp.int32))
        in_specs.append(pl.BlockSpec((None, 1, tile), lambda b, i: (b, 0, i)))

    kernel = functools.partial(
        _dice_partial_kernel, n_classes=n_classes, hw=hw, tile_n=tile,
        do_softmax=bool(softmax), has_ignore=ignore is not None,
        has_tail=has_tail)

    # Per-batch lane-dense partial sums: (B, [intersect, z_sum, y_sum], C, 128)
    partials = pl.pallas_call(
        kernel,
        out_shape=jax.ShapeDtypeStruct((B, 3, n_classes, 128), jnp.float32),
        grid_spec=pltpu.PrefetchScalarGridSpec(
            num_scalar_prefetch=0,
            grid=(B, num_tiles),
            in_specs=in_specs,
            out_specs=pl.BlockSpec((None, 3, n_classes, 128),
                                   lambda b, i: (b, 0, 0, 0)),
        ),
        compiler_params=pltpu.CompilerParams(
            dimension_semantics=("parallel", "arbitrary")),
    )(*args)

    # Tiny epilogue in plain JAX: cross-lane/batch reduce + dice + weighted mean.
    stats = jnp.sum(partials, axis=(0, 3))              # (3, C)
    intersect, z_sum, y_sum = stats[0], stats[1], stats[2]
    smooth = 1e-5
    dice = 1.0 - (2.0 * intersect + smooth) / (z_sum + y_sum + smooth)  # (C,)
    if weight is None:
        w = jnp.ones((n_classes,), jnp.float32)
    else:
        w = jnp.asarray(weight, jnp.float32).reshape(n_classes)
    # NOTE: the PyTorch module also builds a `class_wise_dice` Python list via
    # .item(); it is not returned, so only the scalar loss is reproduced here.
    return jnp.sum(dice * w) / n_classes


def _ref_dice_loss(inputs, target, n_classes, weight=None, softmax=False,
                   ignore=None):
    """Pure-JAX reference mirroring the PyTorch module."""
    if softmax:
        inputs = jax.nn.softmax(inputs, axis=1)
    cls = jnp.arange(n_classes, dtype=jnp.float32).reshape(1, n_classes, 1, 1)
    tgt = target.reshape(target.shape[0], 1, *target.shape[-2:])
    onehot = (tgt.astype(jnp.float32) == cls).astype(jnp.float32)
    if ignore is None:
        keep = jnp.ones(tgt.shape[:1] + tgt.shape[-2:], jnp.float32)
    else:
        keep = (ignore.reshape(tgt.shape[0], *tgt.shape[-2:]) != 1
                ).astype(jnp.float32)
    if weight is None:
        weight = [1.0] * n_classes
    smooth = 1e-5
    loss = 0.0
    for i in range(n_classes):
        s = inputs[:, i] * keep
        t = onehot[:, i] * keep
        intersect = jnp.sum(s * t)
        z = jnp.sum(s * s)
        y = jnp.sum(t * t)
        loss += (1.0 - (2.0 * intersect + smooth) / (z + y + smooth)) * weight[i]
    return loss / n_classes


if __name__ == "__main__":
    n_classes = 4
    B, H, W = 2, 16, 16

    key = jax.random.PRNGKey(0)
    k_logits, k_labels, k_ignore = jax.random.split(key, 3)
    logits = jax.random.normal(k_logits, (B, n_classes, H, W), dtype=jnp.float32)
    labels = jax.random.randint(k_labels, (B, 1, H, W), 0, n_classes,
                                dtype=jnp.int32)

    # Path 1: softmax=True, no ignore, no weight (the common training path).
    loss = dice_loss(logits, labels, n_classes, softmax=True)
    loss = jax.block_until_ready(loss)
    ref = _ref_dice_loss(logits, labels, n_classes, softmax=True)
    assert jnp.allclose(loss, ref, rtol=1e-5, atol=1e-6), (loss, ref)

    # Path 2: ignore mask + per-class weights, softmax=True.
    ignore = jax.random.randint(k_ignore, (B, 1, H, W), 0, 2, dtype=jnp.int32)
    wts = [1.0, 2.0, 0.5, 1.5]
    loss2 = dice_loss(logits, labels, n_classes, weight=wts, softmax=True,
                      ignore=ignore)
    loss2 = jax.block_until_ready(loss2)
    ref2 = _ref_dice_loss(logits, labels, n_classes, weight=wts, softmax=True,
                          ignore=ignore)
    assert jnp.allclose(loss2, ref2, rtol=1e-5, atol=1e-6), (loss2, ref2)

    print("KERNEL_OK")
</pallas_src>

<mosaic_0001>
module attributes {stable_mosaic.version = 11 : i64} {
  func.func @_dice_partial_kernel(%arg0: i32, %arg1: i32, %arg2: memref<1x4x256xf32, #tpu.memory_space<vmem>>, %arg3: memref<1x1x256xi32, #tpu.memory_space<vmem>>, %arg4: memref<1x3x4x128xf32, #tpu.memory_space<vmem>>) attributes {dimension_semantics = [#tpu.dimension_semantics<parallel>, #tpu.dimension_semantics<arbitrary>], iteration_bounds = array<i64: 2, 1>, scalar_prefetch = 0 : i64, scratch_operands = 0 : i64, tpu.core_type = #tpu.core_type<tc>, window_params = [{transform_indices = @transform_0, window_bounds = array<i64: 1, 4, 256>}, {transform_indices = @transform_1, window_bounds = array<i64: 1, 1, 256>}, {transform_indices = @transform_2, window_bounds = array<i64: 1, 3, 4, 128>}]} {
    %c0_i32 = arith.constant 0 : i32
    %0 = arith.cmpi eq, %arg1, %c0_i32 : i32
    %1 = arith.extui %0 : i1 to i32
    %c0_i32_0 = arith.constant 0 : i32
    %2 = arith.cmpi ne, %1, %c0_i32_0 : i32
    scf.if %2 {
      %cst_29 = arith.constant 0.000000e+00 : f32
      %52 = vector.broadcast %cst_29 : f32 to vector<3x4x128xf32>
      %c0_30 = arith.constant 0 : index
      %c0_31 = arith.constant 0 : index
      %c0_32 = arith.constant 0 : index
      %c0_33 = arith.constant 0 : index
      %53 = vector.load %arg4[%c0_30, %c0_31, %c0_32, %c0_33] : memref<1x3x4x128xf32, #tpu.memory_space<vmem>>, vector<1x3x4x128xf32>
      %54 = vector.shape_cast %53 : vector<1x3x4x128xf32> to vector<3x4x128xf32>
      %55 = vector.shape_cast %52 : vector<3x4x128xf32> to vector<1x3x4x128xf32>
      tpu.vector_store %arg4[%c0_30, %c0_31, %c0_32, %c0_33], %55 {strides = array<i32>} : memref<1x3x4x128xf32, #tpu.memory_space<vmem>>, vector<1x3x4x128xf32>,
    } else {
    }
    %c0 = arith.constant 0 : index
    %c0_1 = arith.constant 0 : index
    %c0_2 = arith.constant 0 : index
    %3 = vector.load %arg2[%c0, %c0_1, %c0_2] : memref<1x4x256xf32, #tpu.memory_space<vmem>>, vector<1x4x256xf32>
    %4 = vector.shape_cast %3 : vector<1x4x256xf32> to vector<4x256xf32>
    %c0_3 = arith.constant 0 : index
    %c0_4 = arith.constant 0 : index
    %c0_5 = arith.constant 0 : index
    %5 = vector.load %arg3[%c0_3, %c0_4, %c0_5] : memref<1x1x256xi32, #tpu.memory_space<vmem>>, vector<1x1x256xi32>
    %6 = vector.shape_cast %5 : vector<1x1x256xi32> to vector<1x256xi32>
    %cst = arith.constant dense<0xFF800000> : vector<256xf32>
    %7 = vector.multi_reduction <maximumf>, %4, %cst [0] : vector<4x256xf32> to vector<256xf32>
    %8 = vector.shape_cast %7 : vector<256xf32> to vector<1x256xf32>
    %9 = vector.broadcast %8 : vector<1x256xf32> to vector<4x256xf32>
    %10 = arith.subf %4, %9 : vector<4x256xf32>
    %11 = math.exp %10 : vector<4x256xf32>
    %cst_6 = arith.constant dense<0.000000e+00> : vector<256xf32>
    %12 = vector.multi_reduction <add>, %11, %cst_6 [0] : vector<4x256xf32> to vector<256xf32>
    %13 = vector.shape_cast %12 : vector<256xf32> to vector<1x256xf32>
    %14 = tpu.reciprocal %13 : vector<1x256xf32> -> vector<1x256xf32>
    %15 = vector.broadcast %14 : vector<1x256xf32> to vector<4x256xf32>
    %16 = arith.mulf %11, %15 : vector<4x256xf32>
    %17 = tpu.iota {dimensions = array<i32: 0>} : vector<4x1xi32>
    %18 = vector.broadcast %6 : vector<1x256xi32> to vector<4x256xi32>
    %19 = vector.broadcast %17 : vector<4x1xi32> to vector<4x256xi32>
    %20 = arith.cmpi eq, %18, %19 : vector<4x256xi32>
    %21 = arith.extui %20 : vector<4x256xi1> to vector<4x256xi32>
    %22 = arith.sitofp %21 : vector<4x256xi32> to vector<4x256xf32>
    %23 = arith.mulf %16, %22 : vector<4x256xf32>
    %24 = arith.mulf %16, %16 : vector<4x256xf32>
    %c0_7 = arith.constant 0 : index
    %c0_8 = arith.constant 0 : index
    %c0_9 = arith.constant 0 : index
    %c0_10 = arith.constant 0 : index
    %25 = vector.load %arg4[%c0_7, %c0_8, %c0_9, %c0_10] : memref<1x3x4x128xf32, #tpu.memory_space<vmem>>, vector<1x1x4x128xf32>
    %26 = vector.shape_cast %25 : vector<1x1x4x128xf32> to vector<4x128xf32>
    %27 = vector.extract_strided_slice %23 {offsets = [0, 0], sizes = [4, 128], strides = [1, 1]} : vector<4x256xf32> to vector<4x128xf32>
    %28 = vector.extract_strided_slice %23 {offsets = [0, 128], sizes = [4, 128], strides = [1, 1]} : vector<4x256xf32> to vector<4x128xf32>
    %29 = arith.addf %27, %28 : vector<4x128xf32>
    %30 = arith.addf %26, %29 : vector<4x128xf32>
    %c0_11 = arith.constant 0 : index
    %c0_12 = arith.constant 0 : index
    %c0_13 = arith.constant 0 : index
    %c0_14 = arith.constant 0 : index
    %31 = vector.load %arg4[%c0_11, %c0_12, %c0_13, %c0_14] : memref<1x3x4x128xf32, #tpu.memory_space<vmem>>, vector<1x1x4x128xf32>
    %32 = vector.shape_cast %31 : vector<1x1x4x128xf32> to vector<4x128xf32>
    %33 = vector.shape_cast %30 : vector<4x128xf32> to vector<1x1x4x128xf32>
    tpu.vector_store %arg4[%c0_11, %c0_12, %c0_13, %c0_14], %33 {strides = array<i32>} : memref<1x3x4x128xf32, #tpu.memory_space<vmem>>, vector<1x1x4x128xf32>,
    %c0_15 = arith.constant 0 : index
    %c1 = arith.constant 1 : index
    %c0_16 = arith.constant 0 : index
    %c0_17 = arith.constant 0 : index
    %34 = vector.load %arg4[%c0_15, %c1, %c0_16, %c0_17] : memref<1x3x4x128xf32, #tpu.memory_space<vmem>>, vector<1x1x4x128xf32>
    %35 = vector.shape_cast %34 : vector<1x1x4x128xf32> to vector<4x128xf32>
    %36 = vector.extract_strided_slice %24 {offsets = [0, 0], sizes = [4, 128], strides = [1, 1]} : vector<4x256xf32> to vector<4x128xf32>
    %37 = vector.extract_strided_slice %24 {offsets = [0, 128], sizes = [4, 128], strides = [1, 1]} : vector<4x256xf32> to vector<4x128xf32>
    %38 = arith.addf %36, %37 : vector<4x128xf32>
    %39 = arith.addf %35, %38 : vector<4x128xf32>
    %c0_18 = arith.constant 0 : index
    %c1_19 = arith.constant 1 : index
    %c0_20 = arith.constant 0 : index
    %c0_21 = arith.constant 0 : index
    %40 = vector.load %arg4[%c0_18, %c1_19, %c0_20, %c0_21] : memref<1x3x4x128xf32, #tpu.memory_space<vmem>>, vector<1x1x4x128xf32>
    %41 = vector.shape_cast %40 : vector<1x1x4x128xf32> to vector<4x128xf32>
    %42 = vector.shape_cast %39 : vector<4x128xf32> to vector<1x1x4x128xf32>
    tpu.vector_store %arg4[%c0_18, %c1_19, %c0_20, %c0_21], %42 {strides = array<i32>} : memref<1x3x4x128xf32, #tpu.memory_space<vmem>>, vector<1x1x4x128xf32>,
    %c0_22 = arith.constant 0 : index
    %c2 = arith.constant 2 : index
    %c0_23 = arith.constant 0 : index
    %c0_24 = arith.constant 0 : index
    %43 = vector.load %arg4[%c0_22, %c2, %c0_23, %c0_24] : memref<1x3x4x128xf32, #tpu.memory_space<vmem>>, vector<1x1x4x128xf32>
    %44 = vector.shape_cast %43 : vector<1x1x4x128xf32> to vector<4x128xf32>
    %45 = vector.extract_strided_slice %22 {offsets = [0, 0], sizes = [4, 128], strides = [1, 1]} : vector<4x256xf32> to vector<4x128xf32>
    %46 = vector.extract_strided_slice %22 {offsets = [0, 128], sizes = [4, 128], strides = [1, 1]} : vector<4x256xf32> to vector<4x128xf32>
    %47 = arith.addf %45, %46 : vector<4x128xf32>
    %48 = arith.addf %44, %47 : vector<4x128xf32>
    %c0_25 = arith.constant 0 : index
    %c2_26 = arith.constant 2 : index
    %c0_27 = arith.constant 0 : index
    %c0_28 = arith.constant 0 : index
    %49 = vector.load %arg4[%c0_25, %c2_26, %c0_27, %c0_28] : memref<1x3x4x128xf32, #tpu.memory_space<vmem>>, vector<1x1x4x128xf32>
    %50 = vector.shape_cast %49 : vector<1x1x4x128xf32> to vector<4x128xf32>
    %51 = vector.shape_cast %48 : vector<4x128xf32> to vector<1x1x4x128xf32>
    tpu.vector_store %arg4[%c0_25, %c2_26, %c0_27, %c0_28], %51 {strides = array<i32>} : memref<1x3x4x128xf32, #tpu.memory_space<vmem>>, vector<1x1x4x128xf32>,
    return
  }
  func.func @transform_0(%arg0: i32, %arg1: i32) -> (i32, i32, i32) {
    %c0_i32 = arith.constant 0 : i32
    %c0_i32_0 = arith.constant 0 : i32
    return %arg0, %c0_i32, %arg1 : i32, i32, i32
  }
  func.func @transform_1(%arg0: i32, %arg1: i32) -> (i32, i32, i32) {
    %c0_i32 = arith.constant 0 : i32
    %c0_i32_0 = arith.constant 0 : i32
    return %arg0, %c0_i32, %arg1 : i32, i32, i32
  }
  func.func @transform_2(%arg0: i32, %arg1: i32) -> (i32, i32, i32, i32) {
    %c0_i32 = arith.constant 0 : i32
    %c0_i32_0 = arith.constant 0 : i32
    %c0_i32_1 = arith.constant 0 : i32
    %c0_i32_2 = arith.constant 0 : i32
    return %arg0, %c0_i32, %c0_i32_0, %c0_i32_1 : i32, i32, i32, i32
  }
}

</mosaic_0001>

<bundles_post_ra>
// kernel: tpu_custom_call.1
= control target key start
LH: loop header
LB: loop body
LE: loop exit
PB: predicated region body
PF: predicated region fallthrough
CT: control target
= control target key end

     0   :  { %7 = vsyncpa [#allocation3], 0  ;;  %s950_s0 = inlined_call_operand.hbm [shape: f32[2,4,256], index: 0, kind: input, shape index: {}]   ;;  %s951_s1 = inlined_call_operand.hbm [shape: s32[2,1,256], index: 1, kind: input, shape index: {}]   ;;  %s952_s2 = inlined_call_operand.hbm [shape: f32[2,3,4,128], index: 2, kind: output, shape index: {}]  }
   0x1   :  { %9 = vsyncpa [#allocation3 + $0x1], 0 }
   0x2   :  { %10 = vsyncpa [#allocation6], 0 }
   0x3   :  { %12 = vsyncpa [#allocation6 + $0x1], 0 }
   0x4   :  { %13 = vsyncpa [#allocation4], 0 }
   0x5   :  { %15 = vsyncpa [#allocation4 + $0x1], 0  ;;  %s716_s9 = smov 0   ;;  %s718_s10 = smov 0  }
   0x6   :  { %s720_s11 = smov 0   ;;  %s722_s12 = smov 0  }
   0x7   :  { %s724_s13 = smov 0   ;;  %s726_s14 = smov 0  }
   0x8 LB: > { %s444_s15 = sadd.s32 4294967295, %s693_s14   ;;  %s445_s16 = sadd.s32 4294967294, %s693_s14   ;;  %s693_s14 = sphi %s726_s14, %s21_s14   ;;  %s689_s13 = sphi %s724_s13, %s972_s13   ;;  %s685_s12 = sphi %s722_s12, %s971_s12   ;;  %s681_s11 = sphi %s720_s11, %s970_s11   ;;  %s677_s10 = sphi %s718_s10, %s969_s10   ;;  %s673_s9 = sphi %s716_s9, %s968_s9  }
   0x9   : > { %s33_s17 = sadd.s32 1, %s689_s13  ;;  %s42_s18 = sadd.s32 1, %s681_s11 }
   0xa   : > { %p35_p0 = scmp.ge.s32.totalorder %s33_s17, 2  ;;  %p49_p1 = scmp.ne.s32.totalorder %s681_s11, %s677_s10 }
   0xb   : > { %p50_p2 = scmp.eq.s32.totalorder %s693_s14, 0  ;;  %p55_p3 = scmp.ne.s32.totalorder %s677_s10, %s673_s9 }
   0xc   : > { %s974_s17 = smov (%p35_p0, %s33_s17), 0  ;;  %p56_p5 = scmp.eq.s32.totalorder %s444_s15, 0 }
   0xd   : > { %p757_p4 = por %p50_p2, %p49_p1  ;;  %s37_s20 = ssub.s32 %s689_s13, %s974_s17 }
   0xe   : > { %p107_p6 = scmp.eq.s32.totalorder %s444_s15, 1  ;;  %p40_p7 = scmp.eq.s32.totalorder %s37_s20, 0 }
   0xf   : > { %p763_p8 = por %p56_p5, %p55_p3  ;;  %p113_p10 = scmp.eq.s32.totalorder %s445_s16, 1 }
  0x10   : > { %p767_p9 = por %p107_p6, %p49_p1  ;;  %p487_p13 = scmp.lt.s32.totalorder %s693_s14, 2 }
  0x11   : > { %s956_s21 = scalar_select %p763_p8, 1, 0 }
  0x12   : > { %s957_s22 = scalar_select %p767_p9, 1, 0 }
  0x13   : > { %s772_s23 = scalar_select %p40_p7, %s681_s11, %s42_s18  }
  0x14   : > { %p774_p11 = por %p113_p10, %p55_p3  ;;  %s781_s25 = sand.u32 1, %s681_s11  }
  0x15   : > { %s448_s26 = sshll.u32 %s781_s25, 3  ;;  %s466_s27 = sshll.u32 %s689_s13, 7 }
  0x16   : > { %s958_s24 = scalar_select %p774_p11, 1, 0 }
  0x17   : > { %s788_s30 = scalar_lea.hbm %s950_s0, %s466_s27  ;;  %s137_s3 = scalar_lea.vmem [#allocation2], %s448_s26 }
  0x18   : > { %s147_s4 = sshll.u32 %s137_s3, 4  ;;  %p794_p0 = pnand %p487_p13, %p757_p4  ;;  %s790_s4 = int_to_ptr.vmem [resolvable:$true] %s147_s4 }
  0x19   : > { %s134_s6 = scalar_lea.sflag [#allocation3], %s781_s25  ;;  %s547_s7 = scalar_lea.hbm %s788_s30, 128 }
  0x1a   : > { %p548_p3 = scmp.ne.s32.totalorder %s788_s30, %s547_s7  ;;  %p549_p5 = pneg %p794_p0 }
  0x1b   : > { %s552_s16 = scalar_lea.hbm %s950_s0, 256  ;;  %p553_p4 = scmp.lt.u32.totalorder %s788_s30, %s950_s0 }
  0x1c   : > { %p550_p6 = pnand %p549_p5, %p548_p3  ;;  %p554_p10 = scmp.lt.u32.totalorder %s552_s16, %s547_s7 }
  0x1d   : > { %p556_p12 = scmp.lt.u32.totalorder %s547_s7, %s788_s30 }
  0x1e   : > { %p551_p7 = pneg %p550_p6  ;;  %p555_p13 = por %p554_p10, %p553_p4 }
  0x20   : > { %p557_p1 = por %p556_p12, %p555_p13 }
  0x22   : > { %p558_p2 = pnand %p557_p1, %p551_p7 }
  0x24   : > { %561 = shalt.err (!%p558_p2)
}
  0x25   : > { %s562_s20 = scalar_lea.vmem %s790_s4, 128  ;;  %s695_s26 = smov [#allocation2]  }
  0x26   : > { %p563_p3 = scmp.ne.s32.totalorder %s790_s4, %s562_s20  ;;  %s567_s27 = sshll.u32 %s695_s26, 4  ;;  %s568_s27 = int_to_ptr.vmem [resolvable:$false] %s567_s27 }
  0x27   : > { %s569_s28 = scalar_lea.vmem %s568_s27, 256  ;;  %p570_p9 = scmp.lt.s32.totalorder %s790_s4, %s568_s27 }
  0x28   : > { %p565_p6 = pnand %p563_p3, %p549_p5  ;;  %p571_p4 = scmp.lt.s32.totalorder %s569_s28, %s562_s20 }
  0x2a   : > { %p566_p11 = pneg %p565_p6  ;;  %p572_p10 = por %p571_p4, %p570_p9 }
  0x2c   : > { %p573_p12 = pnand %p572_p10, %p566_p11 }
  0x2e   : > { %576 = shalt.err (!%p573_p12)
}
  0x2f   : > { %479 = dma.hbm_to_vmem [thread:$0]  (!%p794_p0), %s788_s30, 128, %s790_s4, %s134_s6  }
  0x30   : > { %p960_p1 = scmp.lt.s32.totalorder %s693_s14, 3  ;;  %p961_p2 = scmp.ge.s32.totalorder %s693_s14, 1 }
  0x31   : > { %s451_s3 = sshll.u32 %s781_s25, 1  ;;  %s467_s7 = sshll.u32 %s689_s13, 5 }
  0x32   : > { %p830_p7 = pnand %p961_p2, %p960_p1  ;;  %s839_s16 = scalar_lea.hbm %s951_s1, %s467_s7 }
  0x33   : > { %s158_s18 = scalar_lea.vmem [#allocation5], %s451_s3  ;;  %s155_s30 = scalar_lea.sflag [#allocation6], %s781_s25 }
  0x34   : > { %s962_s29 = scalar_select %p830_p7, 1, 0 }
  0x35   : > { %s168_s19 = sshll.u32 %s158_s18, 4  ;;  %s577_s4 = scalar_lea.hbm %s839_s16, 32  ;;  %s169_s19 = int_to_ptr.vmem [resolvable:$true] %s168_s19 }
  0x36   : > { %p578_p9 = scmp.ne.s32.totalorder %s839_s16, %s577_s4  ;;  %s582_s26 = scalar_lea.hbm %s951_s1, 64 }
  0x37   : > { %p583_p3 = scmp.lt.u32.totalorder %s839_s16, %s951_s1  ;;  %p584_p6 = scmp.lt.u32.totalorder %s582_s26, %s577_s4 }
  0x38   : > { %p580_p11 = pnand %p578_p9, %p549_p5  ;;  %p586_p10 = scmp.lt.u32.totalorder %s577_s4, %s839_s16 }
  0x39   : > { %p585_p4 = por %p584_p6, %p583_p3 }
  0x3a   : > { %p581_p13 = pneg %p580_p11 }
  0x3b   : > { %p587_p12 = por %p586_p10, %p585_p4 }
  0x3d   : > { %p588_p1 = pnand %p587_p12, %p581_p13 }
  0x3f   : > { %591 = shalt.err (!%p588_p1)
}
  0x40   : > { %s592_s25 = scalar_lea.vmem %s169_s19, 32  ;;  %s696_s3 = smov [#allocation5]  }
  0x41   : > { %p593_p2 = scmp.ne.s32.totalorder %s169_s19, %s592_s25  ;;  %s597_s7 = sshll.u32 %s696_s3, 4  ;;  %s598_s7 = int_to_ptr.vmem [resolvable:$false] %s597_s7 }
  0x42   : > { %s599_s8 = scalar_lea.vmem %s598_s7, 64  ;;  %p600_p8 = scmp.lt.s32.totalorder %s169_s19, %s598_s7 }
  0x43   : > { %p595_p9 = pnand %p593_p2, %p549_p5  ;;  %p601_p7 = scmp.lt.s32.totalorder %s599_s8, %s592_s25 }
  0x45   : > { %p596_p11 = pneg %p595_p9  ;;  %p602_p3 = por %p601_p7, %p600_p8 }
  0x47   : > { %p603_p6 = pnand %p602_p3, %p596_p11 }
  0x49   : > { %606 = shalt.err (!%p603_p6)
}
  0x4a   : > { %482 = dma.hbm_to_vmem [thread:$0]  (!%p794_p0), %s839_s16, 32, %s169_s19, %s155_s30  }
  0x4b   : > { %p963_p13 = scmp.ne.s32.totalorder %s962_s29, 0 }
  0x4c   : > { %s864_s15 = sand.u32 (!%p963_p13), 1, %s677_s10   ;;  %p964_p5 = scmp.ne.s32.totalorder (!%p963_p13), %s956_s21, 0 }
  0x4d   : > { %177 = sbr.rel (%p963_p13) target bundleno = 175 (0xaf), region = 28  ;;  %s455_s18 = sshll.u32 (!%p963_p13), %s864_s15, 3 }
  0x4e   : > { %s180_s4 = scalar_lea.sflag (!%p963_p13), [#allocation3], %s864_s15  ;;  %s183_s6 = scalar_lea.vmem (!%p963_p13), [#allocation2], %s455_s18 }
  0x54   : > { %660 = dma.done.wait (%p964_p5), %s180_s4, 128  }
  0x55   : > { %662 = vsyncadd (%p964_p5), %s180_s4, 4294967168  ;;  %s456_s5 = sshll.u32 %s864_s15, 1  ;;  %s189_s29 = scalar_lea.sflag [#allocation6], %s864_s15 }
  0x56   : > { %s192_s16 = scalar_lea.vmem [#allocation5], %s456_s5 }
  0x57   : > { %664 = dma.done.wait (%p964_p5), %s189_s29, 32  }
  0x58   : > { %666 = vsyncadd (%p964_p5), %s189_s29, 4294967264  ;;  %s468_s19 = smul.u32 12, %s864_s15  ;;  %v278_v0 = vlaneseq  ;;  %v697_v2 = vmov 0.0   ;;  %vm232_vm0 = vcmask 1043456   ;;  %v228_v5 = vld [vmem:[%s192_s16] sm:$0x3] }
  0x59   : > { %v227_v6 = vld [vmem:[%s183_s6] sm:$0xff]  ;;  %s469_s21 = smul.u32 192, %s685_s12  ;;  %s321_s12 = scalar_lea.sflag [#allocation4], %s864_s15 }
  0x5a   : > { %v279_v1 = vshrl.u32 %v278_v0, 7  ;;  %s879_s30 = scalar_lea.vmem [#allocation7], %s468_s19  ;;  %v230_v9 = vcombine.high %v227_v6, %v227_v6  ;;  %v233_v10 = vsel %vm232_vm0, %v227_v6, -inf  ;;  %p965_p0 = scmp.ne.s32.totalorder %s957_s22, 0 }
  0x5b   : > { %224 = vst [vmem:[%s879_s30] sm:$0xf] %v697_v2  ;;  %225 = vst [vmem:[%s879_s30 + $0x4] sm:$0xf] %v697_v2  ;;  %v234_v11 = vrot.slane %v233_v10, 4  ;;  %s334_s20 = sshll.u32 %s879_s30, 4  ;;  %s897_s28 = scalar_lea.hbm %s952_s2, %s469_s21  ;;  %s899_s20 = int_to_ptr.vmem [resolvable:$true] %s334_s20 }
  0x5c   : > { %226 = vst [vmem:[%s879_s30 + $0x8] sm:$0xf] %v697_v2  ;;  %v282_v3 = vsub.s32 0, %v279_v1  ;;  %v286_v4 = vsub.s32 1, %v279_v1  ;;  %v240_v12 = vsel %vm232_vm0, %v230_v9, -inf  ;;  %s607_s25 = scalar_lea.vmem %s899_s20, 192 }
  0x5d   : > { %v235_v15 = vmax.f32 %v233_v10, %v234_v11  ;;  %v241_v16 = vrot.slane %v240_v12, 4  ;;  %p608_p8 = scmp.ne.s32.totalorder %s899_s20, %s607_s25  ;;  %s698_s3 = smov [#allocation7]  }
  0x5e   : > { %v283_v7 = vrot.slane %v228_v5, %v282_v3  ;;  %v287_v8 = vrot.slane %v228_v5, %v286_v4  ;;  %s611_s7 = sshll.u32 %s698_s3, 4  ;;  %s612_s7 = int_to_ptr.vmem [resolvable:$false] %s611_s7 }
  0x5f   : > { %v236_v19 = vrot.slane %v235_v15, 2  ;;  %v242_v20 = vmax.f32 %v240_v12, %v241_v16  ;;  %p609_p7 = pnand %p608_p8, %p965_p0  ;;  %s613_s8 = scalar_lea.vmem %s612_s7, 384 }
  0x60   : > { %vm288_vm1 = vcmp.eq.s32.totalorder %v283_v7, %v279_v1  ;;  %vm289_vm2 = vcmp.eq.s32.totalorder %v287_v8, %v279_v1  ;;  %p614_p10 = scmp.lt.s32.totalorder %s899_s20, %s612_s7  ;;  %p615_p12 = scmp.lt.s32.totalorder %s613_s8, %s607_s25 }
  0x61   : > { %v457_v13 = vsel %vm288_vm1, 1.0, %v697_v2  ;;  %v458_v14 = vsel %vm289_vm2, 1.0, %v697_v2  ;;  %v237_v22 = vmax.f32 %v235_v15, %v236_v19  ;;  %v243_v23 = vrot.slane %v242_v20, 2  ;;  %p610_p4 = pneg %p609_p7 }
  0x62   : > { %v317_v18 = vadd.f32 %v458_v14, %v457_v13  ;;  %v296_v51 = vcombine.low %v457_v13, %v458_v14  ;;  %v300_v57 = vld [vmem:[%s879_s30] sm:$0xf]  ;;  %v459_v58 = vld [vmem:[%s879_s30 + $0x4] sm:$0xf]  ;;  %p616_p1 = por %p615_p12, %p614_p10 }
  0x63   : > { %v461_v17 = vld [vmem:[%s879_s30 + $0x8] sm:$0xf]  ;;  %v238_v24 = vrot.slane %v237_v22, 1  ;;  %v244_v25 = vmax.f32 %v242_v20, %v243_v23 }
  0x64   : > { %v318_v21 = vadd.f32 %v461_v17, %v317_v18  ;;  %p617_p2 = pnand %p616_p1, %p610_p4 }
  0x65   : > { %v239_v26 = vmax.f32 %v237_v22, %v238_v24  ;;  %v245_v27 = vrot.slane %v244_v25, 1 }
  0x66   : > { %462 = vst [vmem:[%s879_s30 + $0x8] sm:$0xf] %v318_v21 }
  0x67   : > { %v246_v28 = vmax.f32 %v244_v25, %v245_v27 }
  0x69   : > { %v249_v29 = vcombine.low %v239_v26, %v246_v28 }
  0x6b   : > { %v251_v30 = vsub.f32 %v227_v6, %v249_v29 }
  0x6d   : > { %v252_v31 = vmul.f32 1.442695, %v251_v30 }
  0x6f   : > { %541 = vpow2.f32 %v252_v31 }
  0x79   : > { %v542_v32 = vpop.eup %541 }
  0x7a   : > { %v255_v33 = vcombine.high %v542_v32, %v542_v32  ;;  %v257_v34 = vsel %vm232_vm0, %v542_v32, 0.0 }
  0x7b   : > { %v258_v35 = vrot.slane %v257_v34, 4 }
  0x7c   : > { %v264_v36 = vsel %vm232_vm0, %v255_v33, 0.0 }
  0x7d   : > { %v259_v37 = vadd.f32 %v258_v35, %v257_v34  ;;  %v265_v38 = vrot.slane %v264_v36, 4 }
  0x7f   : > { %v260_v39 = vrot.slane %v259_v37, 2  ;;  %v266_v40 = vadd.f32 %v265_v38, %v264_v36 }
  0x81   : > { %v261_v41 = vadd.f32 %v260_v39, %v259_v37  ;;  %v267_v42 = vrot.slane %v266_v40, 2 }
  0x83   : > { %v262_v43 = vrot.slane %v261_v41, 1  ;;  %v268_v44 = vadd.f32 %v267_v42, %v266_v40 }
  0x85   : > { %v263_v45 = vadd.f32 %v262_v43, %v261_v41  ;;  %v269_v46 = vrot.slane %v268_v44, 1 }
  0x87   : > { %v270_v47 = vadd.f32 %v269_v46, %v268_v44  ;;  %543 = vrcp.f32 %v263_v45 }
  0x89   : > { %545 = vrcp.f32 %v270_v47 }
  0x91   : > { %v544_v48 = vpop.eup %543 }
  0x93   : > { %v546_v49 = vpop.eup %545 }
  0x94   : > { %v275_v50 = vcombine.low %v544_v48, %v546_v49 }
  0x96   : > { %v277_v52 = vmul.f32 %v542_v32, %v275_v50 }
  0x98   : > { %v298_v53 = vmul.f32 %v296_v51, %v277_v52  ;;  %v299_v54 = vmul.f32 %v277_v52, %v277_v52 }
  0x9a   : > { %v302_v55 = vrot.slane %v298_v53, 4  ;;  %v310_v56 = vrot.slane %v299_v54, 4 }
  0x9c   : > { %v304_v59 = vadd.f32 %v302_v55, %v298_v53  ;;  %v312_v60 = vadd.f32 %v310_v56, %v299_v54 }
  0x9e   : > { %v305_v61 = vadd.f32 %v304_v59, %v300_v57  ;;  %v313_v62 = vadd.f32 %v459_v58, %v312_v60 }
  0xa0   : > { %306 = vst [vmem:[%s879_s30] sm:$0xf] %v305_v61  ;;  %460 = vst [vmem:[%s879_s30 + $0x4] sm:$0xf] %v313_v62 }
  0xa1   : > { %620 = shalt.err (!%p617_p2)
}
  0xa2   : > { %s621_s18 = scalar_lea.hbm %s897_s28, 192  ;;  %s625_s5 = scalar_lea.hbm %s952_s2, 384 }
  0xa3   : > { %p622_p9 = scmp.ne.s32.totalorder %s897_s28, %s621_s18  ;;  %p626_p6 = scmp.lt.u32.totalorder %s897_s28, %s952_s2 }
  0xa4   : > { %p627_p13 = scmp.lt.u32.totalorder %s625_s5, %s621_s18  ;;  %p629_p8 = scmp.lt.u32.totalorder %s621_s18, %s897_s28 }
  0xa5   : > { %p623_p11 = pnand %p622_p9, %p965_p0 }
  0xa6   : > { %p628_p5 = por %p627_p13, %p626_p6 }
  0xa7   : > { %p624_p3 = pneg %p623_p11 }
  0xa8   : > { %p630_p7 = por %p629_p8, %p628_p5 }
  0xaa   : > { %p631_p4 = pnand %p630_p7, %p624_p3 }
  0xac   : > { %634 = shalt.err (!%p631_p4)
}
  0xad   : > { %s699_s19 = smov 64   ;;  %s700_s30 = smov 4  }
  0xae   : > { %474 = dma.vmem_to_hbm [thread:$0]  (%p965_p0), %s899_s20, 192, %s897_s28, %s321_s12, %s699_s19, %s699_s19, %s700_s30  }
  0xaf PF: > { %s349_s21 = sand.u32 1, %s673_s9   ;;  %p966_p10 = scmp.ne.s32.totalorder %s958_s24, 0 }
  0xb0   : > { %p967_p12 = scmp.ge.s32.totalorder %s693_s14, 2  ;;  %s350_s26 = scalar_lea.sflag [#allocation4], %s349_s21 }
  0xb2   : > { %p484_p1 = pnand %p967_p12, %p966_p10 }
  0xb4   : > { %668 = dma.done.wait (!%p484_p1), %s350_s26, 192  }
  0xb5   : > { %670 = vsyncadd (!%p484_p1), %s350_s26, 4294967104  ;;  %s21_s14 = sadd.s32 1, %s693_s14   ;;  %s968_s9 = smov %s677_s10 }
  0xb6   : > { %p18_p2 = scmp.ge.s32.totalorder %s21_s14, 4   ;;  %s969_s10 = smov %s681_s11 }
  0xb7   : > { %s970_s11 = smov %s772_s23  ;;  %s971_s12 = smov %s689_s13 }
  0xb8   : > { %s972_s13 = smov %s974_s17  ;;  %20 = sbr.rel (!%p18_p2) target bundleno = 8 (0x8), region = 92 }
  0xbf   :  { %355 = vsyncpa [#allocation3], 1 }
  0xc0   :  { %357 = vsyncpa [#allocation3 + $0x1], 1 }
  0xc1   :  { %358 = vsyncpa [#allocation6], 1 }
  0xc2   :  { %360 = vsyncpa [#allocation6 + $0x1], 1 }
  0xc3   :  { %361 = vsyncpa [#allocation4], 1 }
  0xc4   :  { %363 = vsyncpa [#allocation4 + $0x1], 1 }

</bundles_post_ra>
